<compile_context>
chip_gen: v7x
topology: tpu7x:2x2x1
jax: 0.10.0
libtpu: 0.0.40
codegen_flags: <defaults>
</compile_context>

<pallas_src>
import functools
import math

import jax
import jax.numpy as jnp
from jax.experimental import pallas as pl
from jax.experimental.pallas import tpu as pltpu


def make_positional_encoding(max_len, d_model):
    """PositionalEncoding.__init__ `pe` buffer as a (max_len, d_model) float32 array."""
    position = jnp.arange(max_len, dtype=jnp.float32)[:, None]                     # (L, 1)
    div_term = jnp.exp(
        jnp.arange(0, d_model, 2, dtype=jnp.float32) * (-math.log(10000.0) / d_model)
    )                                                                              # (d/2,)
    ang = position * div_term                                                      # (L, d/2)
    pe = jnp.zeros((max_len, d_model), dtype=jnp.float32)
    pe = pe.at[:, 0::2].set(jnp.sin(ang))
    pe = pe.at[:, 1::2].set(jnp.cos(ang))
    return pe


def _round_up(x, m):
    return ((x + m - 1) // m) * m


def _encoder_kernel(ids_ref, emb_ref, pe_ref, out_ref, *, scale, batch):
    # ids_ref : VMEM (rows, 1) int32    flattened token ids for this tile (rows = tile_s*batch)
    # emb_ref : VMEM (ntoken, ninp)     embedding table (constant block index -> copied once)
    # pe_ref  : VMEM (tile_s, ninp)     positional-encoding rows for this sequence tile
    # out_ref : VMEM (rows, ninp)       flattened (seq*batch, ninp) output tile
    rows = ids_ref.shape[0]
    ntoken = emb_ref.shape[0]
    tile_s = pe_ref.shape[0]

    ids = ids_ref[...]                                                  # (rows, 1) int32

    # (a) Embedding gather as a one-hot matmul on the (otherwise idle) MXU.
    #     Exactly one 1.0 per row; f32 HIGHEST precision => exact row selection.
    tok_col = jax.lax.broadcasted_iota(jnp.int32, (rows, ntoken), 1)
    tok_onehot = jnp.where(tok_col == ids, 1.0, 0.0).astype(jnp.float32)
    emb_rows = jnp.dot(tok_onehot, emb_ref[...],
                       preferred_element_type=jnp.float32,
                       precision=jax.lax.Precision.HIGHEST)             # (rows, ninp)

    # (b) Positional-encoding expansion over the batch dim (flattened row n uses
    #     pe[n // batch]) as a second tiny one-hot matmul — no HBM repeat, no sublane gather.
    row_idx = jax.lax.broadcasted_iota(jnp.int32, (rows, tile_s), 0)
    seq_start = jax.lax.broadcasted_iota(jnp.int32, (rows, tile_s), 1) * batch
    pe_onehot = jnp.where((row_idx >= seq_start) & (row_idx < seq_start + batch),
                          1.0, 0.0).astype(jnp.float32)
    pe_rows = jnp.dot(pe_onehot, pe_ref[...],
                      preferred_element_type=jnp.float32,
                      precision=jax.lax.Precision.HIGHEST)              # (rows, ninp)

    # (c) Single fused scale + PE add, single dense block store for the whole tile.
    out_ref[...] = emb_rows * scale + pe_rows


_VMEM_CAP_BYTES = 48 * 1024 * 1024    # conservative cap (v7x has 64 MiB per TensorCore)
_ONEHOT_BYTES_CAP = 4 * 1024 * 1024   # bound the in-kernel (rows, ntoken) one-hot footprint


def _encoder_pallas(ids_flat, emb_weight, pe_seq, batch):
    # ids_flat: (S*B,) int32, row-major over (seq, batch); pe_seq: (S, ninp) float32.
    ntoken, ninp = emb_weight.shape
    S = pe_seq.shape[0]
    B = batch

    # --- tiling: up to ~1024 flattened rows per grid step, bounded by one-hot VMEM -------
    max_rows_by_onehot = max(8, (_ONEHOT_BYTES_CAP // (4 * ntoken)) // 8 * 8)
    target_rows = max(8, min(1024, max_rows_by_onehot))
    tile_s = max(1, target_rows // B)
    tile_s = _round_up(min(tile_s, S), 8)        # multiple of 8 -> (8,128)-friendly blocks
    S_pad = _round_up(S, tile_s)
    num_tiles = S_pad // tile_s                  # >= 2 for long sequences -> v7x megacore
    rows = tile_s * B                            # flattened token rows per tile

    # --- explicit capability check (replaces the old blanket try/except fallback) --------
    table_bytes = ntoken * ninp * 4
    tile_bytes = (2 * tile_s * ninp * 4          # pe tile (double-buffered)
                  + 2 * rows * 128 * 4           # ids tile ((rows, 1) int32 pads to lanes)
                  + 2 * rows * ninp * 4          # output tile (double-buffered)
                  + rows * ntoken * 4            # token one-hot intermediate
                  + rows * max(tile_s, 128) * 4  # pe one-hot intermediate
                  + 2 * rows * ninp * 4)         # matmul results
    vmem_need = 2 * table_bytes + tile_bytes + (2 << 20)
    if vmem_need > _VMEM_CAP_BYTES:
        # TODO(synk): HBM-resident table (memory_space=pl.ANY) + per-tile DMA row gather
        #             (and/or bf16 table storage) for vocabularies that do not fit VMEM.
        raise NotImplementedError(
            f"embedding table/tiles need ~{vmem_need >> 20} MiB VMEM; the VMEM-resident "
            "one-hot gather path only supports small/medium vocabularies")
    vmem_limit = int(min(max(vmem_need, 32 * 1024 * 1024), _VMEM_CAP_BYTES))

    # --- pad to whole tiles (padded rows gather token 0 and are sliced off below) --------
    n = S * B
    n_pad = S_pad * B
    ids_p = jnp.pad(ids_flat, (0, n_pad - n)).reshape(n_pad, 1)
    pe_p = jnp.pad(pe_seq, ((0, S_pad - S), (0, 0)))

    kernel = functools.partial(_encoder_kernel, scale=float(math.sqrt(ninp)), batch=B)

    out_flat = pl.pallas_call(
        kernel,
        out_shape=jax.ShapeDtypeStruct((n_pad, ninp), jnp.float32),
        grid=(num_tiles,),
        in_specs=[
            pl.BlockSpec((rows, 1), lambda i: (i, 0)),           # token ids (VMEM block)
            # Full table; constant block index => the pipeline copies it to VMEM only once
            # (the double-buffer allocation is accounted for in the VMEM budget above).
            pl.BlockSpec((ntoken, ninp), lambda i: (0, 0)),
            pl.BlockSpec((tile_s, ninp), lambda i: (i, 0)),      # pe rows for this seq tile
        ],
        out_specs=pl.BlockSpec((rows, ninp), lambda i: (i, 0)),
        compiler_params=pltpu.CompilerParams(
            dimension_semantics=("parallel",),                   # independent seq tiles
            vmem_limit_bytes=vmem_limit,
        ),
    )(ids_p, emb_weight, pe_p)

    return out_flat[:n]


def encoder_forward(src, emb_weight, pe):
    """src: (batch, seq) int token ids; emb_weight: (ntoken, ninp) f32; pe: (max_len, ninp).

    Returns (seq, batch, ninp) float32 — same as the PyTorch Encoder.forward (eval mode).
    """
    B, S = src.shape
    ntoken, ninp = emb_weight.shape
    assert S <= pe.shape[0], "sequence length exceeds positional-encoding max_len"

    # `src.t()` glue: flattened row n corresponds to (seq = n // B, batch = n % B).
    # clip guards against OOB one-hot columns (PyTorch's nn.Embedding would raise instead).
    ids_flat = jnp.clip(src.T.astype(jnp.int32), 0, ntoken - 1).reshape(S * B)

    flat = _encoder_pallas(ids_flat, emb_weight, pe[:S], B)
    return flat.reshape(S, B, ninp)               # row-major reshape of contiguous rows (free)


if __name__ == "__main__":
    key = jax.random.PRNGKey(0)
    k_emb, k_src = jax.random.split(key)

    ntoken, ninp = 64, 32        # vocab size, model dim
    batch, seq = 2, 8            # small shapes

    # Deterministic parameter init, matching Encoder.init_weights: U(-0.1, 0.1)
    emb_weight = jax.random.uniform(
        k_emb, (ntoken, ninp), dtype=jnp.float32, minval=-0.1, maxval=0.1
    )
    pe = make_positional_encoding(max_len=64, d_model=ninp)

    src = jax.random.randint(k_src, (batch, seq), 0, ntoken, dtype=jnp.int32)

    out = encoder_forward(src, emb_weight, pe)
    out = jax.block_until_ready(out)

    # Pure-JAX reference of the same forward pass (eval-mode dropout = identity).
    ref = jnp.take(emb_weight, src.T, axis=0) * math.sqrt(ninp) + pe[:seq][:, None, :]
    assert out.shape == (seq, batch, ninp)
    assert jnp.allclose(out, ref, atol=1e-5), "Pallas output mismatch vs reference"

    print("KERNEL_OK")
</pallas_src>

<mosaic_0001>
module attributes {stable_mosaic.version = 11 : i64} {
  func.func @_encoder_kernel(%arg0: i32, %arg1: memref<16x1xi32, #tpu.memory_space<vmem>>, %arg2: memref<64x32xf32, #tpu.memory_space<vmem>>, %arg3: memref<8x32xf32, #tpu.memory_space<vmem>>, %arg4: memref<16x32xf32, #tpu.memory_space<vmem>>) attributes {dimension_semantics = [#tpu.dimension_semantics<parallel>], iteration_bounds = array<i64: 1>, scalar_prefetch = 0 : i64, scratch_operands = 0 : i64, tpu.core_type = #tpu.core_type<tc>, window_params = [{transform_indices = @transform_0, window_bounds = array<i64: 16, 1>}, {pipeline_mode = #tpu.pipeline_mode<synchronous>, transform_indices = @transform_1, window_bounds = array<i64: 64, 32>}, {transform_indices = @transform_2, window_bounds = array<i64: 8, 32>}, {transform_indices = @transform_3, window_bounds = array<i64: 16, 32>}]} {
    %c0 = arith.constant 0 : index
    %c0_0 = arith.constant 0 : index
    %0 = vector.load %arg1[%c0, %c0_0] : memref<16x1xi32, #tpu.memory_space<vmem>>, vector<16x1xi32>
    %1 = tpu.iota {dimensions = array<i32: 1>} : vector<16x64xi32>
    %2 = vector.broadcast %0 : vector<16x1xi32> to vector<16x64xi32>
    %3 = arith.cmpi eq, %1, %2 : vector<16x64xi32>
    %cst = arith.constant 1.000000e+00 : f32
    %cst_1 = arith.constant 0.000000e+00 : f32
    %4 = vector.broadcast %cst : f32 to vector<16x64xf32>
    %5 = vector.broadcast %cst_1 : f32 to vector<16x64xf32>
    %6 = arith.select %3, %4, %5 : vector<16x64xi1>, vector<16x64xf32>
    %c0_2 = arith.constant 0 : index
    %c0_3 = arith.constant 0 : index
    %7 = vector.load %arg2[%c0_2, %c0_3] : memref<64x32xf32, #tpu.memory_space<vmem>>, vector<64x32xf32>
    %cst_4 = arith.constant dense<0.000000e+00> : vector<16x32xf32>
    %8 = tpu.matmul %6, %7, %cst_4 {dimension_numbers = #tpu.dot_dimension_numbers<[1], [0], [0], [1], [0, 0, 1, 1], [], []>, precision = #tpu.contract_precision<fp32>} : vector<16x64xf32>, vector<64x32xf32>, vector<16x32xf32> -> vector<16x32xf32>
    %9 = tpu.iota {dimensions = array<i32: 0>} : vector<16x8xi32>
    %10 = tpu.iota {dimensions = array<i32: 1>} : vector<16x8xi32>
    %c2_i32 = arith.constant 2 : i32
    %11 = vector.broadcast %c2_i32 : i32 to vector<16x8xi32>
    %12 = arith.muli %10, %11 : vector<16x8xi32>
    %13 = arith.cmpi sge, %9, %12 : vector<16x8xi32>
    %c2_i32_5 = arith.constant 2 : i32
    %14 = vector.broadcast %c2_i32_5 : i32 to vector<16x8xi32>
    %15 = arith.addi %12, %14 : vector<16x8xi32>
    %16 = arith.cmpi slt, %9, %15 : vector<16x8xi32>
    %17 = arith.andi %13, %16 : vector<16x8xi1>
    %cst_6 = arith.constant 1.000000e+00 : f32
    %cst_7 = arith.constant 0.000000e+00 : f32
    %18 = vector.broadcast %cst_6 : f32 to vector<16x8xf32>
    %19 = vector.broadcast %cst_7 : f32 to vector<16x8xf32>
    %20 = arith.select %17, %18, %19 : vector<16x8xi1>, vector<16x8xf32>
    %c0_8 = arith.constant 0 : index
    %c0_9 = arith.constant 0 : index
    %21 = vector.load %arg3[%c0_8, %c0_9] : memref<8x32xf32, #tpu.memory_space<vmem>>, vector<8x32xf32>
    %cst_10 = arith.constant dense<0.000000e+00> : vector<16x32xf32>
    %22 = tpu.matmul %20, %21, %cst_10 {dimension_numbers = #tpu.dot_dimension_numbers<[1], [0], [0], [1], [0, 0, 1, 1], [], []>, precision = #tpu.contract_precision<fp32>} : vector<16x8xf32>, vector<8x32xf32>, vector<16x32xf32> -> vector<16x32xf32>
    %cst_11 = arith.constant 5.65685415 : f32
    %23 = vector.broadcast %cst_11 : f32 to vector<16x32xf32>
    %24 = arith.mulf %8, %23 : vector<16x32xf32>
    %25 = arith.addf %24, %22 : vector<16x32xf32>
    %c0_12 = arith.constant 0 : index
    %c0_13 = arith.constant 0 : index
    %26 = vector.load %arg4[%c0_12, %c0_13] : memref<16x32xf32, #tpu.memory_space<vmem>>, vector<16x32xf32>
    tpu.vector_store %arg4[%c0_12, %c0_13], %25 {strides = array<i32>} : memref<16x32xf32, #tpu.memory_space<vmem>>, vector<16x32xf32>,
    return
  }
  func.func @transform_0(%arg0: i32) -> (i32, i32) {
    %c0_i32 = arith.constant 0 : i32
    %c0_i32_0 = arith.constant 0 : i32
    return %arg0, %c0_i32 : i32, i32
  }
  func.func @transform_1(%arg0: i32) -> (i32, i32) {
    %c0_i32 = arith.constant 0 : i32
    %c0_i32_0 = arith.constant 0 : i32
    %c0_i32_1 = arith.constant 0 : i32
    return %c0_i32, %c0_i32_0 : i32, i32
  }
  func.func @transform_2(%arg0: i32) -> (i32, i32) {
    %c0_i32 = arith.constant 0 : i32
    %c0_i32_0 = arith.constant 0 : i32
    return %arg0, %c0_i32 : i32, i32
  }
  func.func @transform_3(%arg0: i32) -> (i32, i32) {
    %c0_i32 = arith.constant 0 : i32
    %c0_i32_0 = arith.constant 0 : i32
    return %arg0, %c0_i32 : i32, i32
  }
}

</mosaic_0001>

<bundles_post_ra>
// kernel: tpu_custom_call.1
= control target key start
LH: loop header
LB: loop body
LE: loop exit
PB: predicated region body
PF: predicated region fallthrough
CT: control target
= control target key end

     0   :  { %v1537_v2 = vmov 0   ;;  %s1740_s0 = inlined_call_operand.vmem [shape: s32[16,1], index: 0, kind: input, shape index: {}]   ;;  %s1741_s1 = inlined_call_operand.vmem [shape: f32[64,32], index: 1, kind: input, shape index: {}]   ;;  %s1742_s2 = inlined_call_operand.vmem [shape: f32[8,32], index: 2, kind: input, shape index: {}]   ;;  %s1743_s3 = inlined_call_operand.hbm [shape: f32[16,32], index: 3, kind: output, shape index: {}]  }
   0x1   :  { %v15_v0 = vld [vmem:[%s1740_s0] sm:$0xff]  ;;  %1512 = vset.pattern.permute.xlu0 %v1537_v2  ;;  %v30_v3 = vld [vmem:[%s1741_s1 + $0x8] sm:$0xff]  ;;  %v31_v5 = vld [vmem:[%s1741_s1 + $0x10] sm:$0xff] }
   0x2   :  { %v29_v1 = vld [vmem:[%s1741_s1] sm:$0xff]  ;;  %v32_v6 = vld [vmem:[%s1741_s1 + $0x18] sm:$0xff]  ;;  %20 = vperm.xlu0 %1512, %v15_v0   ;;  %v48_v7 = vand.u32 4294901760, %v30_v3  ;;  %v51_v8 = vand.u32 4294901760, %v31_v5  ;;  %v34_v11 = vld [vmem:[%s1741_s1 + $0x28] sm:$0xff] }
   0x3   :  { %v45_v4 = vand.u32 4294901760, %v29_v1  ;;  %v54_v9 = vand.u32 4294901760, %v32_v6  ;;  %v33_v10 = vld [vmem:[%s1741_s1 + $0x20] sm:$0xff]  ;;  %v16_v12 = vld [vmem:[%s1740_s0 + $0x8] sm:$0xff]  ;;  %v60_v15 = vand.u32 4294901760, %v34_v11  ;;  %v35_v16 = vld [vmem:[%s1741_s1 + $0x30] sm:$0xff] }
   0x4   :  { %v57_v14 = vand.u32 4294901760, %v33_v10  ;;  %v1593_v18 = vsub.f32 %v30_v3, %v48_v7  ;;  %v1597_v20 = vsub.f32 %v31_v5, %v51_v8 }
   0x5   :  { %v1586_v13 = vsub.f32 %v29_v1, %v45_v4  ;;  %v1591_v17 = vpack.c.bf16 %v48_v7, %v45_v4  ;;  %v1595_v19 = vpack.c.bf16 %v54_v9, %v51_v8 }
   0x6   :  { %8 = vsyncpa [#allocation3], 0  ;;  %v1599_v21 = vsub.f32 %v32_v6, %v54_v9  ;;  %v36_v22 = vld [vmem:[%s1741_s1 + $0x38] sm:$0xff]  ;;  %23 = vperm.xlu0 %1512, %v16_v12   ;;  %v167_v24 = vsub.f32 %v33_v10, %v57_v14  ;;  %v174_v25 = vsub.f32 %v34_v11, %v60_v15  ;;  %v63_v26 = vand.u32 4294901760, %v35_v16 }
   0x7   :  { %v1423_v23 = vpack.c.bf16 %v1593_v18, %v1586_v13  ;;  %1392 = vmatprep.subr.bf16.mxu1 %v1591_v17  ;;  %v1610_v28 = vpack.c.bf16 %v60_v15, %v57_v14  ;;  %v66_v29 = vand.u32 4294901760, %v36_v22  ;;  %v140_v30 = vand.u32 4294901760, %v1586_v13 }
   0x8   :  { %v1427_v27 = vpack.c.bf16 %v1599_v21, %v1597_v20  ;;  %1394 = vmatpush3.bf16.msra.mxu1 %v1591_v17  ;;  %v147_v31 = vand.u32 4294901760, %v1593_v18  ;;  %v1431_v32 = vpack.c.bf16 %v174_v25, %v167_v24  ;;  %v181_v33 = vsub.f32 %v35_v16, %v63_v26 }
   0x9   :  { %1424 = vmatprep.subr.bf16.mxu0 %v1423_v23  ;;  %1396 = vmatprep.subr.bf16.mxu1 %v1595_v19  ;;  %v188_v34 = vsub.f32 %v36_v22, %v66_v29  ;;  %v141_v35 = vsub.f32 %v1586_v13, %v140_v30  ;;  %v1618_v37 = vpack.c.bf16 %v66_v29, %v63_v26  ;;  %v154_v40 = vand.u32 4294901760, %v1597_v20 }
   0xa   :  { %1426 = vmatpush3.bf16.msra.mxu0 %v1423_v23  ;;  %v148_v36 = vsub.f32 %v1593_v18, %v147_v31  ;;  %v161_v41 = vand.u32 4294901760, %v1599_v21  ;;  %v168_v48 = vand.u32 4294901760, %v167_v24  ;;  %v175_v49 = vand.u32 4294901760, %v174_v25 }
   0xb   :  { %1428 = vmatprep.subr.bf16.mxu0 %v1427_v27  ;;  %v142_v38 = vand.u32 4294901760, %v141_v35  ;;  %v1435_v42 = vpack.c.bf16 %v188_v34, %v181_v33  ;;  %v155_v43 = vsub.f32 %v1597_v20, %v154_v40  ;;  %v182_v55 = vand.u32 4294901760, %v181_v33 }
   0xc   :  { %1398 = vmatpush3.bf16.msra.mxu1 %v1595_v19  ;;  %v149_v39 = vand.u32 4294901760, %v148_v36  ;;  %v162_v44 = vsub.f32 %v1599_v21, %v161_v41  ;;  %v169_v51 = vsub.f32 %v167_v24, %v168_v48  ;;  %v176_v52 = vsub.f32 %v174_v25, %v175_v49  ;;  %v637_v25 = vld [vmem:[%s1742_s2] sm:$0xff]  ;;  %s1539_s2 = smov [#allocation2]  }
   0xd   :  { %1400 = vmatprep.subr.bf16.mxu1 %v1610_v28  ;;  %v156_v46 = vand.u32 4294901760, %v155_v43  ;;  %v189_v56 = vand.u32 4294901760, %v188_v34  ;;  %v183_v58 = vsub.f32 %v181_v33, %v182_v55  ;;  %v1636_v60 = vpack.c.bf16 %v147_v31, %v140_v30  ;;  %s1146_s5 = sshll.u32 %s1539_s2, 4  ;;  %s1147_s5 = int_to_ptr.vmem [resolvable:$true] %s1146_s5 }
   0xe   :  { %1430 = vmatpush3.bf16.msra.mxu0 %v1427_v27  ;;  %v1627_v45 = vpack.c.bf16 %v149_v39, %v142_v38  ;;  %v163_v47 = vand.u32 4294901760, %v162_v44  ;;  %v170_v53 = vand.u32 4294901760, %v169_v51  ;;  %v177_v54 = vand.u32 4294901760, %v176_v52  ;;  %s1513_s6 = scalar_lea.vmem %s1147_s5, 256  ;;  %p1518_p1 = scmp.lt.s32.totalorder %s1147_s5, %s1147_s5 }
   0xf   :  { %1432 = vmatprep.subr.bf16.mxu0 %v1431_v32  ;;  %v190_v59 = vsub.f32 %v188_v34, %v189_v56  ;;  %v184_v61 = vand.u32 4294901760, %v183_v58  ;;  %v1640_v0 = vpack.c.bf16 %v161_v41, %v154_v40  ;;  %v1642_v1 = vpack.c.bf16 %v175_v49, %v168_v48  ;;  %p1514_p0 = scmp.ne.s32.totalorder %s1147_s5, %s1513_s6  ;;  %p1519_p2 = scmp.lt.s32.totalorder %s1513_s6, %s1513_s6 }
  0x10   :  { %1402 = vmatpush3.bf16.msra.mxu1 %v1610_v28  ;;  %v1630_v50 = vpack.c.bf16 %v163_v47, %v156_v46  ;;  %v1634_v57 = vpack.c.bf16 %v177_v54, %v170_v53  ;;  %v1644_v2 = vpack.c.bf16 %v189_v56, %v182_v55  ;;  %v17_v3 = vlaneseq }
  0x11   :  { %1404 = vmatprep.subr.bf16.mxu1 %v1618_v37  ;;  %v191_v62 = vand.u32 4294901760, %v190_v59  ;;  %vm37_vm0 = vcmask 523264   ;;  %v1538_v9 = vmov 0.0   ;;  %vm638_vm9 = vcmask 64512   ;;  %p1520_p3 = por %p1519_p2, %p1518_p1 }
  0x12   :  { %1434 = vmatpush3.bf16.msra.mxu0 %v1431_v32  ;;  %v18_v4 = vand.u32 127, %v17_v3  ;;  %v625_v6 = vshrl.u32 %v17_v3, 7  ;;  %v1663_v30 = vand.u32 4294901760, %v637_v25  ;;  %vm1138_vm10 = vcmask 261120  }
  0x13   :  { %1436 = vmatprep.subr.bf16.mxu0 %v1435_v42  ;;  %v1638_v63 = vpack.c.bf16 %v191_v62, %v184_v61  ;;  %p1521_p4 = pnand %p1520_p3, %p1514_p0 }
  0x14   :  { %1406 = vmatpush3.bf16.msra.mxu1 %v1618_v37  ;;  %v627_v5 = vmul.u32 2, %v18_v4  ;;  %v626_v12 = vadd.s32 8, %v625_v6  ;;  %v733_v34 = vsub.f32 %v637_v25, %v1663_v30 }
  0x15   :  { %1408 = vmatprep.subr.bf16.mxu1 %v1627_v45 }
  0x16   :  { %1438 = vmatpush3.bf16.msra.mxu0 %v1435_v42  ;;  %v630_v8 = vadd.s32 2, %v627_v5  ;;  %vm628_vm2 = vcmp.ge.s32.totalorder %v625_v6, %v627_v5  ;;  %vm629_vm5 = vcmp.ge.s32.totalorder %v626_v12, %v627_v5  ;;  %v734_v38 = vand.u32 4294901760, %v733_v34 }
  0x17   :  { %1440 = vmatprep.subr.bf16.mxu0 %v1591_v17 }
  0x18   :  { %vm631_vm3 = vcmp.lt.s32.totalorder %v625_v6, %v630_v8  ;;  %vm632_vm6 = vcmp.lt.s32.totalorder %v626_v12, %v630_v8  ;;  %v735_v41 = vsub.f32 %v733_v34, %v734_v38 }
  0x19   :  { %vm633_vm7 = vmand %vm628_vm2, %vm631_vm3 }
  0x1a   :  { %vm634_vm8 = vmand %vm629_vm5, %vm632_vm6  ;;  %v1654_v24 = vsel %vm633_vm7, 1.0, %v1538_v9  ;;  %v736_v44 = vand.u32 4294901760, %v735_v41 }
  0x1b   :  { %v1661_v27 = vsel %vm634_vm8, 1.0, %v1538_v9  ;;  %v640_v31 = vsel %vm638_vm9, %v1654_v24, 0 }
  0x1c   :  { %v712_v32 = vsub.f32 %v640_v31, %v640_v31  ;;  %v643_v33 = vsel %vm638_vm9, %v1661_v27, 0 }
  0x1d   :  { %v722_v35 = vsub.f32 %v643_v33, %v643_v33 }
  0x1e   :  { %v713_v36 = vand.u32 4294901760, %v712_v32 }
  0x1f   :  { %v723_v39 = vand.u32 4294901760, %v722_v35 }
  0x20   :  { %v714_v40 = vsub.f32 %v712_v32, %v713_v36 }
  0x21   :  { %v724_v42 = vsub.f32 %v722_v35, %v723_v39 }
  0x22   :  { %v715_v43 = vand.u32 4294901760, %v714_v40 }
  0x81   :  { %v21_v7 = vpop.permute.xlu0 %20 }
  0x82   :  { %vm25_vm1 = vcmp.eq.s32.totalorder %v18_v4, %v21_v7 }
  0x83   :  { %v1646_v10 = vsel %vm25_vm1, 1.0, %v1538_v9 }
  0x84   :  { %v39_v11 = vsel %vm37_vm0, %v1646_v10, 0 }
  0x85   :  { %v24_v13 = vpop.permute.xlu0 %23  ;;  %v118_v14 = vsub.f32 %v39_v11, %v39_v11 }
  0x86   :  { %vm26_vm4 = vcmp.eq.s32.totalorder %v18_v4, %v24_v13 }
  0x87   :  { %v1650_v15 = vsel %vm26_vm4, 1.0, %v1538_v9  ;;  %1301 = vmatprep.mubr.f32.mxu0 %v118_v14  ;;  %v119_v16 = vand.u32 4294901760, %v118_v14 }
  0x88   :  { %v42_v18 = vsel %vm37_vm0, %v1650_v15, 0 }
  0x89   :  { %v128_v20 = vsub.f32 %v42_v18, %v42_v18  ;;  %v120_v21 = vsub.f32 %v118_v14, %v119_v16 }
  0x8b   :  { %1302 = vmatmul.mubr.f32.vlgmr.msra.gmra.mrb[0].mxu0 %v128_v20  ;;  %v121_v22 = vand.u32 4294901760, %v120_v21  ;;  %v129_v23 = vand.u32 4294901760, %v128_v20 }
  0x8c   :  { %1442 = vmatpush3.bf16.msra.mxu0 %v1591_v17  ;;  %1320 = vmatprep.mubr.f32.mxu0 %v119_v16 }
  0x8d   :  { %1263 = vmatprep.mubr.f32.mxu1 %v121_v22  ;;  %1444 = vmatprep.subr.bf16.mxu0 %v1595_v19  ;;  %v130_v26 = vsub.f32 %v128_v20, %v129_v23 }
  0x8f   :  { %v131_v29 = vand.u32 4294901760, %v130_v26 }
  0x90   :  { %1446 = vmatpush3.bf16.msra.mxu0 %v1595_v19 }
  0x91   :  { %1264 = vmatmul.mubr.f32.vlgmr.msra.gmra.mrb[0].mxu1 %v131_v29  ;;  %1448 = vmatprep.subr.bf16.mxu0 %v1610_v28 }
  0x92   :  { %1410 = vmatpush3.bf16.msra.mxu1 %v1627_v45  ;;  %1282 = vmatprep.mubr.msk.f32.mxu1 %vm37_vm0, %v1646_v10  ;;  %v725_v45 = vand.u32 4294901760, %v724_v42 }
  0x93   :  { %1412 = vmatprep.subr.bf16.mxu1 %v1630_v50 }
  0x94   :  { %1450 = vmatpush3.bf16.msra.mxu0 %v1610_v28 }
  0x95   :  { %1452 = vmatprep.subr.bf16.mxu0 %v1618_v37 }
  0x96   :  { %1414 = vmatpush3.bf16.msra.mxu1 %v1630_v50 }
  0x97   :  { %1416 = vmatprep.subr.bf16.mxu1 %v1634_v57 }
  0x98   :  { %1454 = vmatpush3.bf16.msra.mxu0 %v1618_v37 }
  0x99   :  { %1456 = vmatprep.subr.bf16.mxu0 %v1636_v60 }
  0x9a   :  { %1418 = vmatpush3.bf16.msra.mxu1 %v1634_v57 }
  0x9b   :  { %1321 = vmatmul.mubr.f32.vlgmr.msra.gmra.mrb[0].mxu0 %v129_v23  ;;  %1420 = vmatprep.subr.bf16.mxu1 %v1638_v63 }
  0x9c   :  { %1458 = vmatpush3.bf16.msra.mxu0 %v1636_v60  ;;  %1339 = vmatprep.mubr.msk.f32.mxu0 %vm37_vm0, %v1646_v10 }
  0x9d   :  { %1460 = vmatprep.subr.bf16.mxu0 %v1640_v0 }
  0x9e   :  { %1422 = vmatpush3.bf16.msra.mxu1 %v1638_v63 }
  0x9f   :  { %1361 = vmatprep.subr.mxu1 %v1663_v30 }
  0xa0   :  { %1462 = vmatpush3.bf16.msra.mxu0 %v1640_v0 }
  0xa1   :  { %1283 = vmatmul.mubr.msk.f32.vlgmr.msra.gmra.mrb[0].mxu1 %vm37_vm0, %v1650_v15  ;;  %1464 = vmatprep.subr.bf16.mxu0 %v1642_v1 }
  0xa2   :  { %1362 = vmatpush3.msra.mxu1 %v1663_v30  ;;  %1363 = vmatprep.mubr.f32.mxu1 %v715_v43 }
  0xa3   :  { %1366 = vmatprep.subr.mxu1 %v736_v44 }
  0xa4   :  { %1466 = vmatpush3.bf16.msra.mxu0 %v1642_v1 }
  0xa5   :  { %1364 = vmatmul.mubr.f32.vlgmr.msra.gmra.mrb[2].mxu1 %v725_v45  ;;  %1468 = vmatprep.subr.bf16.mxu0 %v1644_v2 }
  0xa6   :  { %1367 = vmatpush3.msra.mxu1 %v736_v44  ;;  %1368 = vmatprep.mubr.msk.f32.mxu1 %vm638_vm9, %v1654_v24 }
  0xa7   :  { %1371 = vmatprep.subr.mxu1 %v733_v34 }
  0xa8   :  { %1470 = vmatpush3.bf16.msra.mxu0 %v1644_v2 }
  0xa9   :  { %1472 = vmatprep.subr.bf16.mxu0 %v1591_v17 }
  0xab   :  { %1340 = vmatmul.mubr.msk.f32.vlgmr.msra.gmra.mrb[0].mxu0 %vm37_vm0, %v1650_v15 }
  0xac   :  { %1474 = vmatpush3.bf16.msra.mxu0 %v1591_v17  ;;  %1358 = vmatprep.mubr.msk.f32.mxu0 %vm37_vm0, %v1646_v10 }
  0xad   :  { %1369 = vmatmul.mubr.msk.f32.vlgmr.msra.gmra.mrb[2].mxu1 %vm638_vm9, %v1661_v27  ;;  %1476 = vmatprep.subr.bf16.mxu0 %v1595_v19 }
  0xae   :  { %1372 = vmatpush3.msra.mxu1 %v733_v34  ;;  %1373 = vmatprep.mubr.f32.mxu1 %v712_v32 }
  0xaf   :  { %1376 = vmatprep.subr.mxu1 %v1663_v30 }
  0xb0   :  { %1478 = vmatpush3.bf16.msra.mxu0 %v1595_v19 }
  0xb1   :  { %1480 = vmatprep.subr.bf16.mxu0 %v1610_v28 }
  0xb4   :  { %1482 = vmatpush3.bf16.msra.mxu0 %v1610_v28 }
  0xb5   :  { %1374 = vmatmul.mubr.f32.vlgmr.msra.gmra.mrb[2].mxu1 %v722_v35  ;;  %1484 = vmatprep.subr.bf16.mxu0 %v1618_v37 }
  0xb6   :  { %1377 = vmatpush3.msra.mxu1 %v1663_v30  ;;  %1378 = vmatprep.mubr.f32.mxu1 %v713_v36 }
  0xb7   :  { %1381 = vmatprep.subr.mxu1 %v734_v38 }
  0xb8   :  { %1486 = vmatpush3.bf16.msra.mxu0 %v1618_v37 }
  0xbb   :  { %1359 = vmatmul.mubr.msk.f32.vlgmr.msra.gmra.mrb[0].mxu0 %vm37_vm0, %v1650_v15 }
  0xbd   :  { %1379 = vmatmul.mubr.f32.vlgmr.msra.gmra.mrb[2].mxu1 %v723_v39 }
  0xbe   :  { %1382 = vmatpush3.msra.mxu1 %v734_v38  ;;  %1383 = vmatprep.mubr.msk.f32.mxu1 %vm638_vm9, %v1654_v24 }
  0xbf   :  { %1386 = vmatprep.subr.mxu1 %v1663_v30 }
  0xc5   :  { %1384 = vmatmul.mubr.msk.f32.vlgmr.msra.gmra.mrb[2].mxu1 %vm638_vm9, %v1661_v27 }
  0xc6   :  { %1387 = vmatpush3.msra.mxu1 %v1663_v30  ;;  %1388 = vmatprep.mubr.msk.f32.mxu1 %vm638_vm9, %v1654_v24 }
  0xcd   :  { %1389 = vmatmul.mubr.msk.f32.vlgmr.msra.gmra.mrb[2].mxu1 %vm638_vm9, %v1661_v27 }
 0x174   :  { %v1284_v17 = vpop.f32.mrb[0].mxu1 }
 0x175   :  { %v244_v19 = vpop.f32.mrb[1].mxu1 }
 0x18e   :  { %v1360_v28 = vpop.f32.mrb[0].mxu0 }
 0x18f   :  { %v1487_v37 = vadd.f32 %v1360_v28, %v1284_v17  ;;  %v614_v46 = vpop.f32.mrb[1].mxu0 }
 0x190   :  { %v1488_v47 = vadd.f32 %v614_v46, %v244_v19 }
 0x191   :  { %v1135_v48 = vmul.f32 5.656854, %v1487_v37 }
 0x192   :  { %v1134_v49 = vmul.f32 5.656854, %v1488_v47 }
 0x1a0   :  { %v1390_v50 = vpop.f32.mrb[2].mxu1 }
 0x1a1   :  { %v1137_v51 = vadd.f32 %v1390_v50, %v1135_v48  ;;  %v1124_v52 = vpop.f32.mrb[3].mxu1 }
 0x1a2   :  { %v1136_v53 = vadd.f32 %v1134_v49, %v1124_v52 }
 0x1a3   :  { %1140 = vst.msk [vmem:[#allocation2 + $0x8] sm:$0xff] %vm1138_vm10, %v1137_v51 }
 0x1a4   :  { %1139 = vst.msk [vmem:[#allocation2] sm:$0xff] %vm1138_vm10, %v1136_v53 }
 0x1a5   :  { %1524 = shalt.err (!%p1521_p4)
}
 0x1a6   :  { %s1525_s9 = scalar_lea.hbm %s1743_s3, 256 }
 0x1a7   :  { %p1526_p5 = scmp.ne.s32.totalorder %s1743_s3, %s1525_s9  ;;  %p1529_p6 = scmp.lt.u32.totalorder %s1525_s9, %s1743_s3 }
 0x1a9   :  { %p1531_p7 = pnand %p1529_p6, %p1526_p5 }
 0x1ab   :  { %1534 = shalt.err (!%p1531_p7)
}
 0x1ac   :  { %s1540_s14 = smov 128   ;;  %s1541_s15 = smov 8  }
 0x1ad   :  { %1152 = dma.vmem_to_hbm [thread:$0]  %s1147_s5, 256, %s1743_s3, [#allocation3], %s1540_s14, %s1540_s14, %s1541_s15  }
 0x1ae   :  { %1535 = dma.done.wait [#allocation3], 256  }
 0x1af   :  { %1536 = vsyncadd [#allocation3], 4294967040 }
 0x1b0   :  { %1156 = vsyncpa [#allocation3], 1 }

</bundles_post_ra>
